<compile_context>
chip_gen: v7x
topology: tpu7x:2x2x1
jax: 0.10.0
libtpu: 0.0.40
codegen_flags: <defaults>
</compile_context>

<pallas_src>
import functools

import jax
import jax.numpy as jnp
from jax.experimental import pallas as pl
from jax.experimental.pallas import tpu as pltpu

BLOCK_SIZE = 128          # max sequence length supported by the module's tril buffer
DROPOUT = 0.25
N_EMBD = 384
HEAD_SIZE = 64            # n_embd // n_head for n_head = 6


def _head_kernel(*refs, head_size, compute_dtype, training, dropout_rate):
    if training:
        seed_ref, x_ref, w_ref, o_ref = refs
    else:
        x_ref, w_ref, o_ref = refs

    bb, T, C = x_ref.shape

    # Fused QKV projection on the flattened (bb*T, C) view: one MXU pass over x with
    # N = 3*HS.  (bb, T) -> (bb*T) collapse is layout-free since T is a multiple of 8.
    x2d = x_ref[...].reshape(bb * T, C)
    kqv = jnp.dot(x2d, w_ref[...], preferred_element_type=compute_dtype)   # (bb*T, 3*HS)
    kqv = kqv.reshape(bb, T, 3 * head_size)
    k = kqv[:, :, 0:head_size]
    q = kqv[:, :, head_size:2 * head_size]
    v = kqv[:, :, 2 * head_size:3 * head_size]

    # Attention scores: contract the head dim of both operands (no k transpose needed).
    # NOTE: the reference adds C**-0.5 (instead of scaling); softmax is shift-invariant
    # so that constant is dropped here (exact no-op on the forward output).
    wei = jax.lax.dot_general(q, k, (((2,), (2,)), ((0,), (0,))),
                              preferred_element_type=jnp.float32)          # (bb, T, T)

    # Causal (lower-triangular) mask from iota; no (T, T) tril buffer DMA.
    row = jax.lax.broadcasted_iota(jnp.int32, (T, T), 0)
    col = jax.lax.broadcasted_iota(jnp.int32, (T, T), 1)
    wei = jnp.where((col <= row)[None, :, :], wei, -jnp.inf)

    # Numerically stable row softmax in f32; denominator reciprocal on the EUP.
    wei = jnp.exp(wei - jnp.max(wei, axis=-1, keepdims=True))
    inv = pl.reciprocal(jnp.sum(wei, axis=-1, keepdims=True), approx=True)
    if training and dropout_rate > 0.0:
        # Fold the inverted-dropout keep-scale into the (T, 1) reciprocal.
        inv = inv * (1.0 / (1.0 - dropout_rate))
    wei = wei * inv

    if training and dropout_rate > 0.0:
        # On-chip PRNG dropout: raw uint32 threshold compare, pure select.
        # TODO(synk): cannot bitwise-match PyTorch's dropout RNG stream.
        pltpu.prng_seed(seed_ref[0] + pl.program_id(0))
        bits = pltpu.bitcast(pltpu.prng_random_bits(wei.shape), jnp.uint32)
        thresh = jnp.uint32(int(dropout_rate * 4294967296.0))
        wei = jnp.where(bits >= thresh, wei, 0.0)

    # Weighted sum of values: (bb, T, T) @ (bb, T, HS) -> (bb, T, HS).
    out = jax.lax.dot_general(wei.astype(compute_dtype), v,
                              (((2,), (1,)), ((0,), (0,))),
                              preferred_element_type=jnp.float32)
    o_ref[...] = out.astype(o_ref.dtype)


def _compute_dtype():
    # bf16 MXU operands only on a real TPU backend; CPU (interpret) stays f32 so the
    # XLA CPU DotThunk never sees a bf16 x bf16 = f32 dot.
    return jnp.bfloat16 if jax.default_backend() == "tpu" else jnp.float32


def head_forward(x, wk, wq, wv, *, training: bool = False, seed: int = 0,
                 batch_block: int | None = None):
    """Single attention head. x: (B, T, C); wk/wq/wv: (C, head_size) == torch W.T."""
    B, T, C = x.shape
    HS = wk.shape[1]
    assert T <= BLOCK_SIZE, "module's tril buffer only covers T <= block_size"
    out_dtype = x.dtype

    compute_dtype = _compute_dtype()
    xc = x.astype(compute_dtype)
    # Fused QKV weight: one (C, 3*HS) matmul instead of three (C, HS) ones.
    w_kqv = jnp.concatenate([wk, wq, wv], axis=1).astype(compute_dtype)

    # Batch multiple batch elements per grid step (amortize per-step pipeline overhead),
    # but keep the grid length >= 2 so both v7x TensorCores get work.
    if batch_block is None:
        bb = max(1, min(8, B // 2)) if B >= 2 else 1
    else:
        bb = max(1, min(int(batch_block), B))
    nsteps = -(-B // bb)
    Bp = nsteps * bb
    if Bp != B:
        xc = jnp.pad(xc, ((0, Bp - B), (0, 0), (0, 0)))

    # Rough VMEM budget (double-buffered x & out tiles, resident fused weight,
    # f32 score / kqv intermediates), capped at v7x's 64 MiB physical VMEM.
    w_itemsize = jnp.dtype(compute_dtype).itemsize
    est = (2 * bb * T * C * w_itemsize
           + 2 * bb * T * HS * jnp.dtype(out_dtype).itemsize
           + 2 * C * 3 * HS * w_itemsize
           + 6 * bb * T * T * 4
           + 4 * bb * T * 3 * HS * 4)
    vmem_limit = int(min(64 * 2 ** 20, max(32 * 2 ** 20, 2 * est)))

    kernel = functools.partial(_head_kernel, head_size=HS, compute_dtype=compute_dtype,
                               training=training, dropout_rate=DROPOUT)

    if training:
        grid_spec = pltpu.PrefetchScalarGridSpec(
            num_scalar_prefetch=1,
            grid=(nsteps,),
            in_specs=[
                pl.BlockSpec((bb, T, C), lambda i, seed_ref: (i, 0, 0)),     # x tile
                pl.BlockSpec((C, 3 * HS), lambda i, seed_ref: (0, 0)),       # fused W (resident)
            ],
            out_specs=pl.BlockSpec((bb, T, HS), lambda i, seed_ref: (i, 0, 0)),
        )
        args = (jnp.array([seed], dtype=jnp.int32), xc, w_kqv)
    else:
        grid_spec = pltpu.PrefetchScalarGridSpec(
            num_scalar_prefetch=0,
            grid=(nsteps,),
            in_specs=[
                pl.BlockSpec((bb, T, C), lambda i: (i, 0, 0)),               # x tile
                pl.BlockSpec((C, 3 * HS), lambda i: (0, 0)),                 # fused W (resident)
            ],
            out_specs=pl.BlockSpec((bb, T, HS), lambda i: (i, 0, 0)),
        )
        args = (xc, w_kqv)

    out = pl.pallas_call(
        kernel,
        out_shape=jax.ShapeDtypeStruct((Bp, T, HS), out_dtype),
        grid_spec=grid_spec,
        compiler_params=pltpu.CompilerParams(
            dimension_semantics=("parallel",),
            vmem_limit_bytes=vmem_limit),
    )(*args)

    return out[:B] if Bp != B else out


def head_reference(x, wk, wq, wv):
    """Plain-JAX reference matching the kernel's numerics (same compute dtype,
    f32 accumulation, f32 softmax, eval mode).  Keeps the reference's `+ C**-0.5`."""
    B, T, C = x.shape
    HS = wk.shape[1]
    cd = _compute_dtype()
    xc = x.astype(cd)
    w = jnp.concatenate([wk, wq, wv], axis=1).astype(cd)
    kqv = jnp.einsum("btc,cf->btf", xc, w, preferred_element_type=cd)
    k, q, v = kqv[..., :HS], kqv[..., HS:2 * HS], kqv[..., 2 * HS:]
    wei = jnp.einsum("bqh,bkh->bqk", q, k, preferred_element_type=jnp.float32)
    wei = wei + float(C) ** -0.5                      # reference quirk (no-op under softmax)
    mask = jnp.tril(jnp.ones((T, T), dtype=bool))
    wei = jnp.where(mask[None], wei, -jnp.inf)
    wei = jax.nn.softmax(wei, axis=-1)
    out = jnp.einsum("bqk,bkh->bqh", wei.astype(cd), v, preferred_element_type=jnp.float32)
    return out.astype(x.dtype)


def init_params(key, n_embd=N_EMBD, head_size=HEAD_SIZE, dtype=jnp.float32):
    """PyTorch Linear default init (U(-1/sqrt(fan_in), +1/sqrt(fan_in)), no bias);
    weights stored as (in, out) == torch weight.T."""
    k1, k2, k3 = jax.random.split(key, 3)
    bound = 1.0 / jnp.sqrt(n_embd)
    wk = jax.random.uniform(k1, (n_embd, head_size), dtype, -bound, bound)
    wq = jax.random.uniform(k2, (n_embd, head_size), dtype, -bound, bound)
    wv = jax.random.uniform(k3, (n_embd, head_size), dtype, -bound, bound)
    return wk, wq, wv


if __name__ == "__main__":
    key = jax.random.PRNGKey(0)
    kx, kp = jax.random.split(key)

    B, T, C = 2, 8, N_EMBD
    x = jax.random.normal(kx, (B, T, C), dtype=jnp.float32)
    wk, wq, wv = init_params(kp)

    # Eval-mode forward (dropout is identity in eval; train mode uses the on-chip PRNG
    # and cannot bitwise-match torch's RNG stream).
    out = head_forward(x, wk, wq, wv, training=False)
    out = jax.block_until_ready(out)

    assert out.shape == (B, T, HEAD_SIZE)
    ref = head_reference(x, wk, wq, wv)
    assert jnp.allclose(out, ref, atol=2e-2, rtol=2e-2), "mismatch vs reference"

    print("KERNEL_OK")
</pallas_src>

<mosaic_0001>
module attributes {stable_mosaic.version = 11 : i64} {
  func.func @_head_kernel(%arg0: i32, %arg1: memref<1x8x384xf32, #tpu.memory_space<vmem>>, %arg2: memref<384x192xf32, #tpu.memory_space<vmem>>, %arg3: memref<1x8x64xf32, #tpu.memory_space<vmem>>) attributes {dimension_semantics = [#tpu.dimension_semantics<parallel>], iteration_bounds = array<i64: 2>, scalar_prefetch = 0 : i64, scratch_operands = 0 : i64, tpu.core_type = #tpu.core_type<tc>, window_params = [{transform_indices = @transform_0, window_bounds = array<i64: 1, 8, 384>}, {pipeline_mode = #tpu.pipeline_mode<synchronous>, transform_indices = @transform_1, window_bounds = array<i64: 384, 192>}, {transform_indices = @transform_2, window_bounds = array<i64: 1, 8, 64>}]} {
    %c0 = arith.constant 0 : index
    %c0_0 = arith.constant 0 : index
    %c0_1 = arith.constant 0 : index
    %0 = vector.load %arg1[%c0, %c0_0, %c0_1] : memref<1x8x384xf32, #tpu.memory_space<vmem>>, vector<1x8x384xf32>
    %1 = vector.shape_cast %0 : vector<1x8x384xf32> to vector<8x384xf32>
    %c0_2 = arith.constant 0 : index
    %c0_3 = arith.constant 0 : index
    %2 = vector.load %arg2[%c0_2, %c0_3] : memref<384x192xf32, #tpu.memory_space<vmem>>, vector<384x192xf32>
    %cst = arith.constant dense<0.000000e+00> : vector<8x192xf32>
    %3 = tpu.matmul %1, %2, %cst {dimension_numbers = #tpu.dot_dimension_numbers<[1], [0], [0], [1], [0, 0, 1, 1], [], []>} : vector<8x384xf32>, vector<384x192xf32>, vector<8x192xf32> -> vector<8x192xf32>
    %4 = vector.shape_cast %3 : vector<8x192xf32> to vector<1x8x192xf32>
    %5 = vector.extract_strided_slice %4 {offsets = [0, 0, 0], sizes = [1, 8, 64], strides = [1, 1, 1]} : vector<1x8x192xf32> to vector<1x8x64xf32>
    %6 = vector.extract_strided_slice %4 {offsets = [0, 0, 64], sizes = [1, 8, 64], strides = [1, 1, 1]} : vector<1x8x192xf32> to vector<1x8x64xf32>
    %7 = vector.extract_strided_slice %4 {offsets = [0, 0, 128], sizes = [1, 8, 64], strides = [1, 1, 1]} : vector<1x8x192xf32> to vector<1x8x64xf32>
    %cst_4 = arith.constant dense<0.000000e+00> : vector<1x8x8xf32>
    %8 = tpu.matmul %6, %5, %cst_4 {dimension_numbers = #tpu.dot_dimension_numbers<[2], [2], [1], [1], [0, 0, 0, 1, 1, 1], [0], [0]>} : vector<1x8x64xf32>, vector<1x8x64xf32>, vector<1x8x8xf32> -> vector<1x8x8xf32>
    %9 = tpu.iota {dimensions = array<i32: 0>} : vector<8x8xi32>
    %10 = tpu.iota {dimensions = array<i32: 1>} : vector<8x8xi32>
    %11 = arith.cmpi sle, %10, %9 : vector<8x8xi32>
    %12 = vector.shape_cast %11 : vector<8x8xi1> to vector<1x8x8xi1>
    %cst_5 = arith.constant 0xFF800000 : f32
    %13 = vector.broadcast %cst_5 : f32 to vector<1x8x8xf32>
    %14 = arith.select %12, %8, %13 : vector<1x8x8xi1>, vector<1x8x8xf32>
    %cst_6 = arith.constant dense<0xFF800000> : vector<1x8xf32>
    %15 = vector.multi_reduction <maximumf>, %14, %cst_6 [2] : vector<1x8x8xf32> to vector<1x8xf32>
    %16 = vector.shape_cast %15 : vector<1x8xf32> to vector<1x8x1xf32>
    %17 = vector.broadcast %16 : vector<1x8x1xf32> to vector<1x8x8xf32>
    %18 = arith.subf %14, %17 : vector<1x8x8xf32>
    %19 = math.exp %18 : vector<1x8x8xf32>
    %cst_7 = arith.constant dense<0.000000e+00> : vector<1x8xf32>
    %20 = vector.multi_reduction <add>, %19, %cst_7 [2] : vector<1x8x8xf32> to vector<1x8xf32>
    %21 = vector.shape_cast %20 : vector<1x8xf32> to vector<1x8x1xf32>
    %22 = tpu.reciprocal %21 {approx = true} : vector<1x8x1xf32> -> vector<1x8x1xf32>
    %23 = vector.broadcast %22 : vector<1x8x1xf32> to vector<1x8x8xf32>
    %24 = arith.mulf %19, %23 : vector<1x8x8xf32>
    %cst_8 = arith.constant dense<0.000000e+00> : vector<1x8x64xf32>
    %25 = tpu.matmul %24, %7, %cst_8 {dimension_numbers = #tpu.dot_dimension_numbers<[2], [1], [1], [2], [0, 0, 0, 1, 1, 2], [0], [0]>} : vector<1x8x8xf32>, vector<1x8x64xf32>, vector<1x8x64xf32> -> vector<1x8x64xf32>
    %c0_9 = arith.constant 0 : index
    %c0_10 = arith.constant 0 : index
    %c0_11 = arith.constant 0 : index
    %26 = vector.load %arg3[%c0_9, %c0_10, %c0_11] : memref<1x8x64xf32, #tpu.memory_space<vmem>>, vector<1x8x64xf32>
    tpu.vector_store %arg3[%c0_9, %c0_10, %c0_11], %25 {strides = array<i32>} : memref<1x8x64xf32, #tpu.memory_space<vmem>>, vector<1x8x64xf32>,
    return
  }
  func.func @transform_0(%arg0: i32) -> (i32, i32, i32) {
    %c0_i32 = arith.constant 0 : i32
    %c0_i32_0 = arith.constant 0 : i32
    %c0_i32_1 = arith.constant 0 : i32
    return %arg0, %c0_i32, %c0_i32_0 : i32, i32, i32
  }
  func.func @transform_1(%arg0: i32) -> (i32, i32) {
    %c0_i32 = arith.constant 0 : i32
    %c0_i32_0 = arith.constant 0 : i32
    %c0_i32_1 = arith.constant 0 : i32
    return %c0_i32, %c0_i32_0 : i32, i32
  }
  func.func @transform_2(%arg0: i32) -> (i32, i32, i32) {
    %c0_i32 = arith.constant 0 : i32
    %c0_i32_0 = arith.constant 0 : i32
    %c0_i32_1 = arith.constant 0 : i32
    return %arg0, %c0_i32, %c0_i32_0 : i32, i32, i32
  }
}

</mosaic_0001>

<bundles_post_ra>
// kernel: tpu_custom_call.1
= control target key start
LH: loop header
LB: loop body
LE: loop exit
PB: predicated region body
PF: predicated region fallthrough
CT: control target
= control target key end

     0   :  { %7 = vsyncpa [#allocation3], 0  ;;  %s1292_s0 = inlined_call_operand.vmem [shape: f32[2,8,384], index: 0, kind: input, shape index: {}]   ;;  %s1293_s1 = inlined_call_operand.vmem [shape: f32[384,192], index: 1, kind: input, shape index: {}]   ;;  %s1294_s2 = inlined_call_operand.hbm [shape: f32[2,8,64], index: 2, kind: output, shape index: {}]  }
   0x1   :  { %9 = vsyncpa [#allocation3 + $0x1], 0  ;;  %s881_s9 = smov 0   ;;  %s883_s10 = smov 0  }
   0x2   :  { %s885_s11 = smov 0   ;;  %s887_s12 = smov 0  }
   0x3 LB: > { %s902_s13 = sadd.s32 4294967295, %s860_s12   ;;  %s626_s14 = sadd.s32 4294967294, %s860_s12   ;;  %s860_s12 = sphi %s887_s12, %s1300_s12   ;;  %s856_s11 = sphi %s885_s11, %s1299_s11   ;;  %s852_s10 = sphi %s883_s10, %s1298_s10   ;;  %s848_s9 = sphi %s881_s9, %s1297_s9  }
   0x4   : > { %s906_s15 = sadd.s32 1, %s860_s12   ;;  %s69_s16 = sadd.s32 1, %s856_s11 }
   0x5   : > { %s66_s17 = ssub.s32 %s860_s12, %s906_s15  ;;  %p79_p0 = scmp.ne.s32.totalorder %s856_s11, %s852_s10 }
   0x6   : > { %p67_p1 = scmp.eq.s32.totalorder %s66_s17, 0  ;;  %p80_p2 = scmp.eq.s32.totalorder %s902_s13, 1 }
   0x7   : > { %p85_p3 = scmp.ne.s32.totalorder %s852_s10, %s848_s9  ;;  %p86_p4 = scmp.eq.s32.totalorder %s626_s14, 1 }
   0x8   : > { %s917_s18 = scalar_select %p67_p1, %s856_s11, %s69_s16  }
   0x9   : > { %p919_p5 = por %p80_p2, %p79_p0  ;;  %p923_p6 = por %p86_p4, %p85_p3 }
   0xa   : > { %p629_p7 = scmp.ge.s32.totalorder %s860_s12, 1  ;;  %p115_p8 = scmp.lt.s32.totalorder %s860_s12, 3 }
   0xc   : > { %p116_p9 = pnand %p629_p7, %p115_p8 }
   0xd   : > { %v146_v0 = vld [vmem:[%s1293_s1 + $0x8] sm:$0xff] (!%p116_p9)  ;;  %v148_v1 = vld [vmem:[%s1293_s1 + $0x18] sm:$0xff] (!%p116_p9)  ;;  %v145_v2 = vld [vmem:[%s1293_s1] sm:$0xff] (!%p116_p9)  ;;  %v862_v7 = vmov (!%p116_p9), 0.0   ;;  %p137_p10 = scmp.lt.s32.totalorder (!%p116_p9), %s902_s13, 1  ;;  %vm863_vm0 = vmmov (!%p116_p9), 0  }
   0xe   : > { %119 = sbr.rel (%p116_p9) target bundleno = 1162 (0x48a), region = 28  ;;  %v653_v3 = vpack.c.bf16 (!%p116_p9), %v148_v1, %v146_v0  ;;  %v147_v4 = vld [vmem:[%s1293_s1 + $0x10] sm:$0xff] (!%p116_p9)  ;;  %v150_v5 = vld [vmem:[%s1293_s1 + $0x28] sm:$0xff] (!%p116_p9)  ;;  %v152_v6 = vld [vmem:[%s1293_s1 + $0x38] sm:$0xff] (!%p116_p9)  ;;  %376 = vmatprep.mubr.f32.mxu1 (!%p116_p9), %v862_v7  ;;  %vm386_vm1 = vcmask (!%p116_p9), 523264   ;;  %s864_s3 = smov (!%p116_p9), 64  }
   0xf   : > { %v655_v8 = vpack.c.bf16 (!%p116_p9), %v147_v4, %v145_v2  ;;  %v657_v9 = vpack.c.bf16 (!%p116_p9), %v152_v6, %v150_v5  ;;  %v149_v10 = vld [vmem:[%s1293_s1 + $0x20] sm:$0xff] (!%p116_p9)  ;;  %v151_v11 = vld [vmem:[%s1293_s1 + $0x30] sm:$0xff] (!%p116_p9)  ;;  %v154_v12 = vld [vmem:[%s1293_s1 + $0x48] sm:$0xff] (!%p116_p9)  ;;  %vm467_vm3 = vcmask (!%p116_p9), 64512   ;;  %s636_s5 = sshll.u32 (!%p116_p9), %s902_s13, 7 }
  0x10   : > { %654 = vmatprep.subr.bf16.mxu0 (!%p116_p9), %v653_v3  ;;  %v156_v13 = vld [vmem:[%s1293_s1 + $0x58] sm:$0xff] (!%p116_p9)  ;;  %v659_v14 = vpack.c.bf16 (!%p116_p9), %v151_v11, %v149_v10  ;;  %v153_v16 = vld [vmem:[%s1293_s1 + $0x40] sm:$0xff] (!%p116_p9)  ;;  %v155_v17 = vld [vmem:[%s1293_s1 + $0x50] sm:$0xff] (!%p116_p9)  ;;  %s1249_s22 = scalar_lea.hbm (!%p116_p9), %s1294_s2, %s636_s5 }
  0x11   : > { %656 = vmatpush1.bf16.msra.mxu0 (!%p116_p9), %v655_v8  ;;  %v661_v15 = vpack.c.bf16 (!%p116_p9), %v156_v13, %v154_v12  ;;  %v158_v18 = vld [vmem:[%s1293_s1 + $0x68] sm:$0xff] (!%p116_p9)  ;;  %v160_v19 = vld [vmem:[%s1293_s1 + $0x78] sm:$0xff] (!%p116_p9)  ;;  %v663_v20 = vpack.c.bf16 (!%p116_p9), %v155_v17, %v153_v16  ;;  %v157_v22 = vld [vmem:[%s1293_s1 + $0x60] sm:$0xff] (!%p116_p9) }
  0x12   : > { %658 = vmatprep.subr.bf16.mxu0 (!%p116_p9), %v657_v9  ;;  %v665_v21 = vpack.c.bf16 (!%p116_p9), %v160_v19, %v158_v18  ;;  %v159_v23 = vld [vmem:[%s1293_s1 + $0x70] sm:$0xff] (!%p116_p9)  ;;  %v162_v24 = vld [vmem:[%s1293_s1 + $0x88] sm:$0xff] (!%p116_p9)  ;;  %v164_v25 = vld [vmem:[%s1293_s1 + $0x98] sm:$0xff] (!%p116_p9) }
  0x13   : > { %v210_v26 = vld [vmem:[%s1293_s1 + $0x208] sm:$0xff] (!%p116_p9)  ;;  %v212_v27 = vld [vmem:[%s1293_s1 + $0x218] sm:$0xff] (!%p116_p9)  ;;  %v667_v28 = vpack.c.bf16 (!%p116_p9), %v159_v23, %v157_v22  ;;  %v161_v29 = vld [vmem:[%s1293_s1 + $0x80] sm:$0xff] (!%p116_p9)  ;;  %v669_v33 = vpack.c.bf16 (!%p116_p9), %v164_v25, %v162_v24 }
  0x14   : > { %v717_v30 = vpack.c.bf16 (!%p116_p9), %v212_v27, %v210_v26  ;;  %v209_v31 = vld [vmem:[%s1293_s1 + $0x200] sm:$0xff] (!%p116_p9)  ;;  %v211_v32 = vld [vmem:[%s1293_s1 + $0x210] sm:$0xff] (!%p116_p9)  ;;  %v214_v36 = vld [vmem:[%s1293_s1 + $0x228] sm:$0xff] (!%p116_p9) }
  0x15   : > { %660 = vmatpush1.bf16.msra.mxu0 %v659_v14  ;;  %v163_v34 = vld [vmem:[%s1293_s1 + $0x90] sm:$0xff]  ;;  %v719_v35 = vpack.c.bf16 %v211_v32, %v209_v31  ;;  %v216_v37 = vld [vmem:[%s1293_s1 + $0x238] sm:$0xff]  ;;  %v166_v38 = vld [vmem:[%s1293_s1 + $0xa8] sm:$0xff]  ;;  %s1072_s14 = scalar_select %p137_p10, %s902_s13, 1 }
  0x16   : > { %662 = vmatprep.subr.bf16.mxu0 %v661_v15  ;;  %v168_v39 = vld [vmem:[%s1293_s1 + $0xb8] sm:$0xff]  ;;  %718 = vmatprep.subr.bf16.mxu1 %v717_v30  ;;  %v721_v40 = vpack.c.bf16 %v216_v37, %v214_v36  ;;  %v213_v41 = vld [vmem:[%s1293_s1 + $0x220] sm:$0xff]  ;;  %v215_v42 = vld [vmem:[%s1293_s1 + $0x230] sm:$0xff]  ;;  %v671_v43 = vpack.c.bf16 %v163_v34, %v161_v29  ;;  %s865_s13 = smov [#allocation2]  }
  0x17   : > { %720 = vmatpush1.bf16.msra.mxu1 %v719_v35  ;;  %v165_v44 = vld [vmem:[%s1293_s1 + $0xa0] sm:$0xff]  ;;  %v723_v45 = vpack.c.bf16 %v215_v42, %v213_v41  ;;  %v218_v46 = vld [vmem:[%s1293_s1 + $0x248] sm:$0xff]  ;;  %v220_v47 = vld [vmem:[%s1293_s1 + $0x258] sm:$0xff]  ;;  %v673_v48 = vpack.c.bf16 %v168_v39, %v166_v38  ;;  %s751_s7 = smul.u32 24, %s1072_s14 }
  0x18   : > { %722 = vmatprep.subr.bf16.mxu1 %v721_v40  ;;  %v167_v49 = vld [vmem:[%s1293_s1 + $0xb0] sm:$0xff]  ;;  %v725_v50 = vpack.c.bf16 %v220_v47, %v218_v46  ;;  %v217_v51 = vld [vmem:[%s1293_s1 + $0x240] sm:$0xff]  ;;  %v170_v53 = vld [vmem:[%s1293_s1 + $0xc8] sm:$0xff] }
  0x19   : > { %664 = vmatpush1.bf16.msra.mxu0 %v663_v20  ;;  %v219_v52 = vld [vmem:[%s1293_s1 + $0x250] sm:$0xff]  ;;  %v172_v54 = vld [vmem:[%s1293_s1 + $0xd8] sm:$0xff]  ;;  %v222_v55 = vld [vmem:[%s1293_s1 + $0x268] sm:$0xff]  ;;  %v675_v58 = vpack.c.bf16 %v167_v49, %v165_v44  ;;  %s1126_s8 = scalar_lea.vmem %s1292_s0, %s751_s7  ;;  %s802_s7 = sshll.u32 %s865_s13, 4  ;;  %s803_s7 = int_to_ptr.vmem [resolvable:$false] %s802_s7 }
  0x1a   : > { %666 = vmatprep.subr.bf16.mxu0 %v665_v21  ;;  %v727_v56 = vpack.c.bf16 %v219_v52, %v217_v51  ;;  %v224_v57 = vld [vmem:[%s1293_s1 + $0x278] sm:$0xff]  ;;  %v169_v59 = vld [vmem:[%s1293_s1 + $0xc0] sm:$0xff]  ;;  %v223_v62 = vld [vmem:[%s1293_s1 + $0x270] sm:$0xff]  ;;  %v677_v63 = vpack.c.bf16 %v172_v54, %v170_v53  ;;  %s804_s14 = scalar_lea.vmem %s803_s7, 256 }
  0x1b   : > { %724 = vmatpush1.bf16.msra.mxu1 %v723_v45  ;;  %v729_v60 = vpack.c.bf16 %v224_v57, %v222_v55  ;;  %v221_v61 = vld [vmem:[%s1293_s1 + $0x260] sm:$0xff]  ;;  %v171_v0 = vld [vmem:[%s1293_s1 + $0xd0] sm:$0xff]  ;;  %v226_v1 = vld [vmem:[%s1293_s1 + $0x288] sm:$0xff] }
  0x1c   : > { %726 = vmatprep.subr.bf16.mxu1 %v725_v50  ;;  %v228_v2 = vld [vmem:[%s1293_s1 + $0x298] sm:$0xff]  ;;  %v174_v3 = vld [vmem:[%s1293_s1 + $0xe8] sm:$0xff]  ;;  %v731_v5 = vpack.c.bf16 %v223_v62, %v221_v61  ;;  %v679_v6 = vpack.c.bf16 %v171_v0, %v169_v59  ;;  %v173_v8 = vld [vmem:[%s1293_s1 + $0xe0] sm:$0xff] }
  0x1d   : > { %668 = vmatpush1.bf16.msra.mxu0 %v667_v28  ;;  %v176_v4 = vld [vmem:[%s1293_s1 + $0xf8] sm:$0xff]  ;;  %v733_v9 = vpack.c.bf16 %v228_v2, %v226_v1  ;;  %v225_v10 = vld [vmem:[%s1293_s1 + $0x280] sm:$0xff]  ;;  %v227_v11 = vld [vmem:[%s1293_s1 + $0x290] sm:$0xff] }
  0x1e   : > { %670 = vmatprep.subr.bf16.mxu0 %v669_v33  ;;  %v681_v12 = vpack.c.bf16 %v176_v4, %v174_v3  ;;  %v175_v13 = vld [vmem:[%s1293_s1 + $0xf0] sm:$0xff]  ;;  %v230_v14 = vld [vmem:[%s1293_s1 + $0x2a8] sm:$0xff]  ;;  %v232_v15 = vld [vmem:[%s1293_s1 + $0x2b8] sm:$0xff]  ;;  %v735_v18 = vpack.c.bf16 %v227_v11, %v225_v10 }
  0x1f   : > { %728 = vmatpush1.bf16.msra.mxu1 %v727_v56  ;;  %v178_v16 = vld [vmem:[%s1293_s1 + $0x108] sm:$0xff]  ;;  %v180_v17 = vld [vmem:[%s1293_s1 + $0x118] sm:$0xff]  ;;  %v683_v19 = vpack.c.bf16 %v175_v13, %v173_v8  ;;  %v177_v20 = vld [vmem:[%s1293_s1 + $0x100] sm:$0xff]  ;;  %v737_v21 = vpack.c.bf16 %v232_v15, %v230_v14 }
  0x20   : > { %730 = vmatprep.subr.bf16.mxu1 %v729_v60  ;;  %v229_v22 = vld [vmem:[%s1293_s1 + $0x2a0] sm:$0xff]  ;;  %v231_v23 = vld [vmem:[%s1293_s1 + $0x2b0] sm:$0xff]  ;;  %v685_v24 = vpack.c.bf16 %v180_v17, %v178_v16  ;;  %v234_v26 = vld [vmem:[%s1293_s1 + $0x2c8] sm:$0xff] }
  0x21   : > { %672 = vmatpush1.bf16.msra.mxu0 %v671_v43  ;;  %v179_v25 = vld [vmem:[%s1293_s1 + $0x110] sm:$0xff]  ;;  %v236_v27 = vld [vmem:[%s1293_s1 + $0x2d8] sm:$0xff]  ;;  %v182_v28 = vld [vmem:[%s1293_s1 + $0x128] sm:$0xff]  ;;  %v739_v31 = vpack.c.bf16 %v231_v23, %v229_v22 }
  0x22   : > { %674 = vmatprep.subr.bf16.mxu0 %v673_v48  ;;  %v184_v29 = vld [vmem:[%s1293_s1 + $0x138] sm:$0xff]  ;;  %v181_v30 = vld [vmem:[%s1293_s1 + $0x120] sm:$0xff]  ;;  %v687_v32 = vpack.c.bf16 %v179_v25, %v177_v20  ;;  %v741_v33 = vpack.c.bf16 %v236_v27, %v234_v26  ;;  %v235_v35 = vld [vmem:[%s1293_s1 + $0x2d0] sm:$0xff] }
  0x23   : > { %732 = vmatpush1.bf16.msra.mxu1 %v731_v5  ;;  %v233_v34 = vld [vmem:[%s1293_s1 + $0x2c0] sm:$0xff]  ;;  %v143_v36 = vld [vmem:[%s1126_s8 + $0x8] sm:$0xff]  ;;  %v689_v37 = vpack.c.bf16 %v184_v29, %v182_v28  ;;  %v183_v38 = vld [vmem:[%s1293_s1 + $0x130] sm:$0xff]  ;;  %v461_v29 = vlaneseq }
  0x24   : > { %734 = vmatprep.subr.bf16.mxu1 %v733_v9  ;;  %v238_v39 = vld [vmem:[%s1293_s1 + $0x2e8] sm:$0xff]  ;;  %v240_v40 = vld [vmem:[%s1293_s1 + $0x2f8] sm:$0xff]  ;;  %305 = vmatprep.mubr.f32.mxu0 %v143_v36  ;;  %v743_v43 = vpack.c.bf16 %v235_v35, %v233_v34  ;;  %v691_v44 = vpack.c.bf16 %v183_v38, %v181_v30  ;;  %v237_v46 = vld [vmem:[%s1293_s1 + $0x2e0] sm:$0xff] }
  0x25   : > { %676 = vmatpush1.bf16.msra.mxu0 %v675_v58  ;;  %v186_v41 = vld [vmem:[%s1293_s1 + $0x148] sm:$0xff]  ;;  %v188_v42 = vld [vmem:[%s1293_s1 + $0x158] sm:$0xff]  ;;  %v745_v45 = vpack.c.bf16 %v240_v40, %v238_v39  ;;  %v239_v47 = vld [vmem:[%s1293_s1 + $0x2f0] sm:$0xff]  ;;  %v462_v30 = vshrl.u32 %v461_v29, 7 }
  0x26   : > { %678 = vmatprep.subr.bf16.mxu0 %v677_v63  ;;  %v693_v48 = vpack.c.bf16 %v188_v42, %v186_v41  ;;  %v185_v49 = vld [vmem:[%s1293_s1 + $0x140] sm:$0xff]  ;;  %v187_v50 = vld [vmem:[%s1293_s1 + $0x150] sm:$0xff]  ;;  %v190_v51 = vld [vmem:[%s1293_s1 + $0x168] sm:$0xff]  ;;  %v747_v53 = vpack.c.bf16 %v239_v47, %v237_v46 }
  0x27   : > { %736 = vmatpush1.bf16.msra.mxu1 %v735_v18  ;;  %v192_v52 = vld [vmem:[%s1293_s1 + $0x178] sm:$0xff]  ;;  %v695_v54 = vpack.c.bf16 %v187_v50, %v185_v49  ;;  %v189_v56 = vld [vmem:[%s1293_s1 + $0x160] sm:$0xff]  ;;  %v191_v57 = vld [vmem:[%s1293_s1 + $0x170] sm:$0xff] }
  0x28   : > { %738 = vmatprep.subr.bf16.mxu1 %v737_v21  ;;  %v697_v55 = vpack.c.bf16 %v192_v52, %v190_v51  ;;  %v194_v58 = vld [vmem:[%s1293_s1 + $0x188] sm:$0xff]  ;;  %v196_v59 = vld [vmem:[%s1293_s1 + $0x198] sm:$0xff]  ;;  %v144_v60 = vld [vmem:[%s1126_s8 + $0x10] sm:$0xff]  ;;  %v699_v61 = vpack.c.bf16 %v191_v57, %v189_v56 }
  0x29   : > { %680 = vmatpush1.bf16.msra.mxu0 %v679_v6  ;;  %v701_v62 = vpack.c.bf16 %v196_v59, %v194_v58  ;;  %v193_v63 = vld [vmem:[%s1293_s1 + $0x180] sm:$0xff]  ;;  %v195_v0 = vld [vmem:[%s1293_s1 + $0x190] sm:$0xff]  ;;  %v198_v1 = vld [vmem:[%s1293_s1 + $0x1a8] sm:$0xff] }
  0x2a   : > { %682 = vmatprep.subr.bf16.mxu0 %v681_v12  ;;  %v200_v2 = vld [vmem:[%s1293_s1 + $0x1b8] sm:$0xff]  ;;  %v703_v3 = vpack.c.bf16 %v195_v0, %v193_v63  ;;  %v197_v5 = vld [vmem:[%s1293_s1 + $0x1a0] sm:$0xff]  ;;  %v199_v6 = vld [vmem:[%s1293_s1 + $0x1b0] sm:$0xff] }
  0x2b   : > { %740 = vmatpush1.bf16.msra.mxu1 %v739_v31  ;;  %v705_v4 = vpack.c.bf16 %v200_v2, %v198_v1  ;;  %v202_v8 = vld [vmem:[%s1293_s1 + $0x1c8] sm:$0xff]  ;;  %v204_v9 = vld [vmem:[%s1293_s1 + $0x1d8] sm:$0xff]  ;;  %v707_v10 = vpack.c.bf16 %v199_v6, %v197_v5  ;;  %v201_v12 = vld [vmem:[%s1293_s1 + $0x1c0] sm:$0xff]  ;;  %v464_v31 = vand.u32 127, %v461_v29 }
  0x2c   : > { %742 = vmatprep.subr.bf16.mxu1 %v741_v33  ;;  %v709_v11 = vpack.c.bf16 %v204_v9, %v202_v8  ;;  %v203_v13 = vld [vmem:[%s1293_s1 + $0x1d0] sm:$0xff]  ;;  %v206_v14 = vld [vmem:[%s1293_s1 + $0x1e8] sm:$0xff]  ;;  %v208_v15 = vld [vmem:[%s1293_s1 + $0x1f8] sm:$0xff] }
  0x2d   : > { %684 = vmatpush1.bf16.msra.mxu0 %v683_v19  ;;  %v711_v16 = vpack.c.bf16 %v203_v13, %v201_v12  ;;  %v713_v17 = vpack.c.bf16 %v208_v15, %v206_v14  ;;  %v205_v18 = vld [vmem:[%s1293_s1 + $0x1e0] sm:$0xff]  ;;  %v207_v19 = vld [vmem:[%s1293_s1 + $0x1f0] sm:$0xff]  ;;  %vm465_vm2 = vcmp.le.s32.totalorder %v464_v31, %v462_v30 }
  0x2e   : > { %686 = vmatprep.subr.bf16.mxu0 %v685_v24  ;;  %v715_v20 = vpack.c.bf16 %v207_v19, %v205_v18  ;;  %v142_v21 = vld [vmem:[%s1126_s8] sm:$0xff]  ;;  %s134_s8 = sand.u32 1, %s852_s10  }
  0x2f   : > { %744 = vmatpush1.bf16.msra.mxu1 %v743_v43  ;;  %s630_s4 = sshll.u32 %s134_s8, 3  ;;  %s554_s23 = scalar_lea.sflag [#allocation3], %s134_s8 }
  0x30   : > { %746 = vmatprep.subr.bf16.mxu1 %v745_v45  ;;  %s136_s6 = scalar_lea.vmem [#allocation2], %s630_s4 }
  0x31   : > { %688 = vmatpush1.bf16.msra.mxu0 %v687_v32  ;;  %s567_s16 = sshll.u32 %s136_s6, 4  ;;  %s1251_s16 = int_to_ptr.vmem [resolvable:$true] %s567_s16 }
  0x32   : > { %690 = vmatprep.subr.bf16.mxu0 %v689_v37  ;;  %s798_s24 = scalar_lea.vmem %s1251_s16, 128  ;;  %p805_p0 = scmp.lt.s32.totalorder %s1251_s16, %s803_s7 }
  0x33   : > { %748 = vmatpush1.bf16.msra.mxu1 %v747_v53  ;;  %p799_p11 = scmp.ne.s32.totalorder %s1251_s16, %s798_s24  ;;  %p806_p1 = scmp.lt.s32.totalorder %s804_s14, %s798_s24 }
  0x34   : > { %643 = vmatprep.subr.mxu1 %v862_v7 }
  0x35   : > { %692 = vmatpush1.bf16.msra.mxu0 %v691_v44  ;;  %p800_p12 = pnand %p799_p11, %p919_p5  ;;  %p807_p2 = por %p806_p1, %p805_p0 }
  0x36   : > { %694 = vmatprep.subr.bf16.mxu0 %v693_v48  ;;  %377 = vmatmul.mubr.f32.vlgmr.msra.gmra.mrb[0].mxu1 %v144_v60 }
  0x37   : > { %645 = vmatprep.mubr.msk.f32.mxu1 %vm863_vm0, %v862_v7  ;;  %p801_p13 = pneg %p800_p12 }
  0x39   : > { %696 = vmatpush1.bf16.msra.mxu0 %v695_v54  ;;  %p808_p3 = pnand %p807_p2, %p801_p13 }
  0x3a   : > { %698 = vmatprep.subr.bf16.mxu0 %v697_v55 }
  0x3d   : > { %700 = vmatpush1.bf16.msra.mxu0 %v699_v61 }
  0x3e   : > { %702 = vmatprep.subr.bf16.mxu0 %v701_v62 }
  0x41   : > { %704 = vmatpush1.bf16.msra.mxu0 %v703_v3 }
  0x42   : > { %706 = vmatprep.subr.bf16.mxu0 %v705_v4 }
  0x45   : > { %708 = vmatpush1.bf16.msra.mxu0 %v707_v10 }
  0x46   : > { %710 = vmatprep.subr.bf16.mxu0 %v709_v11 }
  0x49   : > { %712 = vmatpush1.bf16.msra.mxu0 %v711_v16 }
  0x4a   : > { %714 = vmatprep.subr.bf16.mxu0 %v713_v17 }
  0x4d   : > { %716 = vmatpush1.bf16.msra.mxu0 %v715_v20 }
  0x50   : > { %306 = vmatmul.mubr.f32.vlgmr.msra.gmra.mrb[0].mxu0 %v142_v21 }
 0x109   : > { %v378_v22 = vpop.f32.mrb[0].mxu1 }
 0x10a   : > { %v380_v23 = vpop.f32.mrb[1].mxu1 }
 0x123   : > { %v307_v24 = vpop.f32.mrb[0].mxu0 }
 0x124   : > { %v379_v25 = vadd.f32 %v378_v22, %v307_v24  ;;  %v309_v26 = vpop.f32.mrb[1].mxu0 }
 0x125   : > { %v381_v27 = vadd.f32 %v380_v23, %v309_v26 }
 0x126   : > { %384 = vrot.lane.b32.xlu0 %v379_v25, %s864_s3  ;;  %644 = vmatpush3.xpose.msk.msra.mxu1 %vm386_vm1, %v379_v25 }
 0x127   : > { %648 = vmatprep.subr.mxu1 %v862_v7 }
 0x198   : > { %v385_v28 = vpop.permute.xlu0 %384 }
 0x199   : > { %646 = vmatmul.mubr.msk.f32.vlgmr.msra.gmra.mrb[2].mxu1 %vm386_vm1, %v385_v28 }
 0x19a   : > { %649 = vmatpush3.msra.mxu1 %v381_v27  ;;  %650 = vmatprep.mubr.msk.f32.mxu1 %vm863_vm0, %v862_v7 }
 0x26c   : > { %v457_v32 = vpop.f32.mrb[2].mxu1 }
 0x26d   : > { %v466_v33 = vsel %vm465_vm2, %v457_v32, -inf  ;;  %v647_v34 = vpop.f32.mrb[3].mxu1 }
 0x26e   : > { %v468_v35 = vsel %vm467_vm3, %v466_v33, -inf }
 0x26f   : > { %469 = vmax.xlane.f32.xlu0 %v468_v35 }
 0x2fc   : > { %v470_v36 = vpop.xlane.xlu0 %469 }
 0x2fd   : > { %v471_v37 = vsub.f32 %v466_v33, %v470_v36 }
 0x2ff   : > { %v472_v38 = vmul.f32 1.442695, %v471_v37 }
 0x301   : > { %794 = vpow2.f32 %v472_v38 }
 0x30b   : > { %v795_v39 = vpop.eup %794 }
 0x30c   : > { %v474_v7 = vsel %vm467_vm3, %v795_v39, 0.0 }
 0x30d   : > { %475 = vadd.xlane.f32.xlu1 %v474_v7 }
 0x39a   : > { %v476_v40 = vpop.xlane.xlu1 %475 }
 0x39b   : > { %796 = vrcp.f32 %v476_v40 }
 0x3a5   : > { %v797_v41 = vpop.eup %796 }
 0x3a6   : > { %v478_v42 = vmul.f32 %v797_v41, %v795_v39 }
 0x3a8   : > { %651 = vmatmul.mubr.msk.f32.vlgmr.msra.gmra.mrb[4].mxu1 %vm467_vm3, %v478_v42 }
 0x47b   : > { %v548_v43 = vpop.f32.mrb[4].mxu1 }
 0x47c   : > { %552 = vst.msk [vmem:[%s136_s6] sm:$0xff] %vm386_vm1, %v548_v43  ;;  %v652_v44 = vpop.f32.mrb[5].mxu1 }
 0x47d   : > { %811 = shalt.err (!%p808_p3)
}
 0x47e   : > { %s812_s25 = scalar_lea.hbm %s1249_s22, 128  ;;  %s816_s28 = scalar_lea.hbm %s1294_s2, 256 }
 0x47f   : > { %p813_p4 = scmp.ne.s32.totalorder %s1249_s22, %s812_s25  ;;  %p817_p9 = scmp.lt.u32.totalorder %s1249_s22, %s1294_s2 }
 0x480   : > { %p818_p10 = scmp.lt.u32.totalorder %s816_s28, %s812_s25  ;;  %p820_p12 = scmp.lt.u32.totalorder %s812_s25, %s1249_s22 }
 0x481   : > { %p814_p7 = pnand %p813_p4, %p919_p5 }
 0x482   : > { %p819_p11 = por %p818_p10, %p817_p9 }
 0x483   : > { %p815_p8 = pneg %p814_p7 }
 0x484   : > { %p821_p13 = por %p820_p12, %p819_p11 }
 0x486   : > { %p822_p0 = pnand %p821_p13, %p815_p8 }
 0x488   : > { %825 = shalt.err (!%p822_p0)
}
 0x489   : > { %752 = dma.vmem_to_hbm [thread:$0]  (%p919_p5), %s1251_s16, 128, %s1249_s22, %s554_s23  }
 0x48a PF: > { %p758_p1 = scmp.ge.s32.totalorder %s860_s12, 2  ;;  %s579_s3 = sand.u32 1, %s848_s9  }
 0x48b   : > { %s580_s8 = scalar_lea.sflag [#allocation3], %s579_s3 }
 0x48c   : > { %p755_p2 = pnand %p758_p1, %p923_p6 }
 0x48e   : > { %843 = dma.done.wait (!%p755_p2), %s580_s8, 128  }
 0x48f   : > { %845 = vsyncadd (!%p755_p2), %s580_s8, 4294967168  ;;  %p12_p3 = scmp.ge.s32.totalorder %s906_s15, 4   ;;  %s1297_s9 = smov %s852_s10 }
 0x490   : > { %s1298_s10 = smov %s856_s11  ;;  %s1299_s11 = smov %s917_s18 }
 0x491   : > { %s1300_s12 = smov %s906_s15  ;;  %14 = sbr.rel (!%p12_p3) target bundleno = 3 (0x3), region = 63 }
 0x498   :  { %585 = vsyncpa [#allocation3], 1 }
 0x499   :  { %587 = vsyncpa [#allocation3 + $0x1], 1 }

</bundles_post_ra>
